<compile_context>
chip_gen: v6e
topology: v6e:2x2x1
jax: 0.10.0
libtpu: 0.0.40
codegen_flags: <defaults>
</compile_context>

<pallas_src>
import functools

import jax
import jax.numpy as jnp
from jax.experimental import pallas as pl
from jax.experimental.pallas import tpu as pltpu


def _cdiv(a, b):
    return (a + b - 1) // b


# ----------------------------------------------------------------------------
# Kernel: one grid step = NB batch elements on one TensorCore
# ----------------------------------------------------------------------------


def _physics_loss_kernel(mask_ref, interior_ref, obs_ref, prd_ref, sic0_ref,
                         o_ref, acc_data_ref, acc_pen_ref, acc_res_ref,
                         *, w1, w2):
    """Refs:
       mask_ref     : (H, W)        f32 ocean mask (landmask == 0)
       interior_ref : (H, W)        f32 interior mask (0 on 1-px border)
       obs_ref      : (NB, 3, H, W) f32
       prd_ref      : (NB, 3, H, W) f32
       sic0_ref     : (NB, H, W)    f32
       o_ref        : (1, 8, 128)   f32 per-core partial sum (last step only)
       acc_*_ref    : (H, W)        f32 deferred-reduction accumulators
    """
    s = pl.program_id(1)
    NB, H, W = sic0_ref.shape

    @pl.when(s == 0)
    def _init():
        acc_data_ref[...] = jnp.zeros_like(acc_data_ref)
        acc_pen_ref[...] = jnp.zeros_like(acc_pen_ref)
        acc_res_ref[...] = jnp.zeros_like(acc_res_ref)

    obs = obs_ref[...]                         # (NB, 3, H, W)
    prd = prd_ref[...]
    s0 = sic0_ref[...]                         # (NB, H, W), raw (unscaled) sic0

    obs0, obs1, obs2 = obs[:, 0], obs[:, 1], obs[:, 2]
    prd0, prd1, prd2 = prd[:, 0], prd[:, 1], prd[:, 2]

    # --- data-loss maps: (30*obs - 30*prd)^2 = 900*(obs-prd)^2; 900 applied at end
    d0 = obs0 - prd0
    d1 = obs1 - prd1
    d2 = obs2 - prd2
    data_map = d0 * d0 + d1 * d1 + d2 * d2

    # --- velocity penalty where sic_p <= 1: u_p^2+v_p^2 = 900*(prd0^2+prd1^2)
    sic_p = prd2 * 100.0
    pen_map = jnp.where(sic_p <= 1.0, prd0 * prd0 + prd1 * prd1, 0.0)

    # --- 3x3 advection stencil via XLU rolls on a (NB*H, W) view.
    # Wrap-around rows/columns only contaminate the 1-px border, which is
    # zeroed by the interior mask (advc == 0 there in the reference).
    s0f = s0.reshape(NB * H, W)
    R = NB * H
    east = pltpu.roll(s0f, shift=W - 1, axis=1)     # s0[..., j+1]
    west = pltpu.roll(s0f, shift=1, axis=1)         # s0[..., j-1]
    south = pltpu.roll(s0f, shift=R - 1, axis=0)    # s0[i+1, ...]
    north = pltpu.roll(s0f, shift=1, axis=0)        # s0[i-1, ...]
    dew = east - west
    dsn = south - north
    dxf = pltpu.roll(dew, shift=1, axis=0) + dew + pltpu.roll(dew, shift=R - 1, axis=0)
    dyf = pltpu.roll(dsn, shift=1, axis=1) + dsn + pltpu.roll(dsn, shift=W - 1, axis=1)
    dx = dxf.reshape(NB, H, W)
    dy = dyf.reshape(NB, H, W)

    # advc = (30*prd0 * 100*dx/3 + 30*prd1 * 100*dy/3) / 50 = 20*(prd0*dx + prd1*dy)
    advc = 20.0 * (prd0 * dx + prd1 * dy) * interior_ref[...]
    residual = (sic_p - 100.0 * s0) + advc
    res_map = jnp.maximum(jnp.abs(residual) - 100.0, 0.0)

    # --- element-wise accumulation only (no cross-lane reductions per step)
    acc_data_ref[...] += jnp.sum(data_map, axis=0)
    acc_pen_ref[...] += jnp.sum(pen_map, axis=0)
    acc_res_ref[...] += jnp.sum(res_map, axis=0)

    @pl.when(s == pl.num_programs(1) - 1)
    def _finish():
        mask = mask_ref[...]
        total = (900.0 * jnp.sum(mask * acc_data_ref[...])
                 + (900.0 * w1) * jnp.sum(mask * acc_pen_ref[...])
                 + w2 * jnp.sum(mask * acc_res_ref[...]))
        o_ref[...] = jnp.broadcast_to(total, o_ref.shape)


# ----------------------------------------------------------------------------
# Wrapper
# ----------------------------------------------------------------------------


def physics_loss(obs, prd, sic0, landmask, *, w1, w2, ncores=2):
    """obs, prd: (N, C>=3, H, W); sic0: (N, H, W); landmask: (H, W)."""
    N, C, H, W = obs.shape
    assert C >= 3 and prd.shape == obs.shape and sic0.shape == (N, H, W)

    obs = obs[:, :3].astype(jnp.float32)
    prd = prd[:, :3].astype(jnp.float32)
    sic0 = sic0.astype(jnp.float32)

    # masks precomputed once (not rebuilt every grid step)
    mask = (landmask == 0).astype(jnp.float32)                  # (H, W) ocean
    interior = jnp.zeros((H, W), jnp.float32)
    if H > 2 and W > 2:
        interior = interior.at[1:-1, 1:-1].set(1.0)

    # --- VMEM budget -> batch block size NB (chip-aware, v7x-safe fallback) ---
    try:
        vmem_cap = int(pltpu.get_tpu_info().vmem_capacity_bytes)
    except Exception:
        vmem_cap = 64 * 1024 * 1024                             # v7x per-TC size
    vmem_limit = min(int(vmem_cap * 0.85), 100 * 1024 * 1024)
    per_elem_bytes = (2 * 3 + 1) * H * W * 4                    # obs + prd + sic0
    budget = vmem_limit // 2                                    # headroom for scratch/masks
    nb = int(max(1, min(_cdiv(N, ncores), budget // (2 * per_elem_bytes))))

    steps = _cdiv(N, ncores * nb)
    n_pad = ncores * nb * steps
    if n_pad != N:
        # zero-padded batch elements contribute exactly 0 to every term
        obs = jnp.pad(obs, ((0, n_pad - N), (0, 0), (0, 0), (0, 0)))
        prd = jnp.pad(prd, ((0, n_pad - N), (0, 0), (0, 0), (0, 0)))
        sic0 = jnp.pad(sic0, ((0, n_pad - N), (0, 0), (0, 0)))

    kern = functools.partial(_physics_loss_kernel, w1=float(w1), w2=float(w2))

    partials = pl.pallas_call(
        kern,
        out_shape=jax.ShapeDtypeStruct((ncores, 8, 128), jnp.float32),
        grid=(ncores, steps),
        in_specs=[
            pl.BlockSpec((H, W), lambda c, s: (0, 0)),                       # ocean mask
            pl.BlockSpec((H, W), lambda c, s: (0, 0)),                       # interior mask
            pl.BlockSpec((nb, 3, H, W), lambda c, s: (c * steps + s, 0, 0, 0)),  # obs
            pl.BlockSpec((nb, 3, H, W), lambda c, s: (c * steps + s, 0, 0, 0)),  # prd
            pl.BlockSpec((nb, H, W), lambda c, s: (c * steps + s, 0, 0)),        # sic0
        ],
        out_specs=pl.BlockSpec((1, 8, 128), lambda c, s: (c, 0, 0)),
        scratch_shapes=[
            pltpu.VMEM((H, W), jnp.float32),   # data-term accumulator
            pltpu.VMEM((H, W), jnp.float32),   # velocity-penalty accumulator
            pltpu.VMEM((H, W), jnp.float32),   # advection-residual accumulator
        ],
        compiler_params=pltpu.CompilerParams(
            dimension_semantics=("parallel", "arbitrary"),  # cores x batch-reduction
            vmem_limit_bytes=vmem_limit,
        ),
    )(mask, interior, obs, prd, sic0)

    k = jnp.sum(mask)                          # ocean-cell count
    # NOTE: k == 0 (all land) yields nan, matching nanmean of an empty slice.
    return jnp.sum(partials[:, 0, 0]) / (k * N)


# ----------------------------------------------------------------------------
# Pure-JAX reference (mirrors the torch code)
# ----------------------------------------------------------------------------


def physics_loss_ref(obs, prd, sic0, landmask, *, w1, w2):
    lm0 = landmask == 0
    u_o, v_o = obs[:, 0] * 30.0, obs[:, 1] * 30.0
    u_p, v_p = prd[:, 0] * 30.0, prd[:, 1] * 30.0
    sic_o30, sic_p30 = obs[:, 2] * 30.0, prd[:, 2] * 30.0
    err1 = jnp.mean(jnp.square(u_o - u_p)[:, lm0])
    err2 = jnp.mean(jnp.square(v_o - v_p)[:, lm0])
    err3 = jnp.mean(jnp.square(sic_o30 - sic_p30)[:, lm0])

    sic_p = prd[:, 2] * 100.0
    s0 = sic0 * 100.0
    err4_map = jnp.mean(jnp.where(sic_p <= 1.0,
                                  jnp.square(u_p) + jnp.square(v_p), 0.0),
                        axis=0)
    err4 = jnp.mean(err4_map[lm0])

    dx = (s0[:, 1:-1, 2:] - s0[:, 1:-1, :-2]
          + (s0[:, 2:, 2:] - s0[:, 2:, :-2])
          + (s0[:, :-2, 2:] - s0[:, :-2, :-2]))
    dy = (s0[:, 2:, 1:-1] - s0[:, :-2, 1:-1]
          + (s0[:, 2:, 2:] - s0[:, :-2, 2:])
          + (s0[:, 2:, :-2] - s0[:, :-2, :-2]))
    advc = jnp.zeros_like(sic_p).at[:, 1:-1, 1:-1].set(
        (u_p[:, 1:-1, 1:-1] * dx / 3.0 + v_p[:, 1:-1, 1:-1] * dy / 3.0) / 50.0)
    residual = (sic_p - s0) + advc
    err_res_map = jnp.mean(jnp.where(jnp.abs(residual) > 100.0,
                                     jnp.abs(residual) - 100.0, 0.0), axis=0)
    err_res = jnp.mean(err_res_map[lm0])
    return err1 + err2 + err3 + w1 * err4 + w2 * err_res


# ----------------------------------------------------------------------------
# Main
# ----------------------------------------------------------------------------

if __name__ == "__main__":
    key = jax.random.PRNGKey(0)
    k_obs, k_prd, k_s0, k_lm = jax.random.split(key, 4)

    N, C, H, W = 2, 3, 16, 16
    obs = jax.random.normal(k_obs, (N, C, H, W), jnp.float32)
    prd = jax.random.normal(k_prd, (N, C, H, W), jnp.float32)
    sic0 = jax.random.normal(k_s0, (N, H, W), jnp.float32)
    landmask = (jax.random.uniform(k_lm, (H, W)) > 0.7).astype(jnp.int32)
    w1, w2 = 0.1, 0.05

    loss_fn = jax.jit(functools.partial(physics_loss, w1=w1, w2=w2))
    out = loss_fn(obs, prd, sic0, landmask)
    out = jax.block_until_ready(out)

    ref = physics_loss_ref(obs, prd, sic0, landmask, w1=w1, w2=w2)

    assert out.shape == (), out.shape
    assert bool(jnp.isfinite(out))
    assert jnp.allclose(out, ref, rtol=1e-4, atol=1e-4), (out, ref)
    print("KERNEL_OK")
</pallas_src>

<mosaic_0001>
module attributes {stable_mosaic.version = 11 : i64} {
  func.func @_physics_loss_kernel(%arg0: i32, %arg1: i32, %arg2: memref<16x16xf32, #tpu.memory_space<vmem>>, %arg3: memref<16x16xf32, #tpu.memory_space<vmem>>, %arg4: memref<1x3x16x16xf32, #tpu.memory_space<vmem>>, %arg5: memref<1x3x16x16xf32, #tpu.memory_space<vmem>>, %arg6: memref<1x16x16xf32, #tpu.memory_space<vmem>>, %arg7: memref<1x8x128xf32, #tpu.memory_space<vmem>>, %arg8: memref<16x16xf32, #tpu.memory_space<vmem>>, %arg9: memref<16x16xf32, #tpu.memory_space<vmem>>, %arg10: memref<16x16xf32, #tpu.memory_space<vmem>>) attributes {dimension_semantics = [#tpu.dimension_semantics<parallel>, #tpu.dimension_semantics<arbitrary>], iteration_bounds = array<i64: 2, 1>, scalar_prefetch = 0 : i64, scratch_operands = 3 : i64, tpu.core_type = #tpu.core_type<tc>, window_params = [{pipeline_mode = #tpu.pipeline_mode<synchronous>, transform_indices = @transform_0, window_bounds = array<i64: 16, 16>}, {pipeline_mode = #tpu.pipeline_mode<synchronous>, transform_indices = @transform_1, window_bounds = array<i64: 16, 16>}, {transform_indices = @transform_2, window_bounds = array<i64: 1, 3, 16, 16>}, {transform_indices = @transform_3, window_bounds = array<i64: 1, 3, 16, 16>}, {transform_indices = @transform_4, window_bounds = array<i64: 1, 16, 16>}, {transform_indices = @transform_5, window_bounds = array<i64: 1, 8, 128>}]} {
    %c0_i32 = arith.constant 0 : i32
    %0 = arith.cmpi eq, %arg1, %c0_i32 : i32
    %1 = arith.extui %0 : i1 to i32
    %c0_i32_0 = arith.constant 0 : i32
    %2 = arith.cmpi ne, %1, %c0_i32_0 : i32
    scf.if %2 {
      %cst_42 = arith.constant 0.000000e+00 : f32
      %84 = vector.broadcast %cst_42 : f32 to vector<16x16xf32>
      %c0_43 = arith.constant 0 : index
      %c0_44 = arith.constant 0 : index
      %85 = vector.load %arg8[%c0_43, %c0_44] : memref<16x16xf32, #tpu.memory_space<vmem>>, vector<16x16xf32>
      tpu.vector_store %arg8[%c0_43, %c0_44], %84 {strides = array<i32>} : memref<16x16xf32, #tpu.memory_space<vmem>>, vector<16x16xf32>,
      %cst_45 = arith.constant 0.000000e+00 : f32
      %86 = vector.broadcast %cst_45 : f32 to vector<16x16xf32>
      %c0_46 = arith.constant 0 : index
      %c0_47 = arith.constant 0 : index
      %87 = vector.load %arg9[%c0_46, %c0_47] : memref<16x16xf32, #tpu.memory_space<vmem>>, vector<16x16xf32>
      tpu.vector_store %arg9[%c0_46, %c0_47], %86 {strides = array<i32>} : memref<16x16xf32, #tpu.memory_space<vmem>>, vector<16x16xf32>,
      %cst_48 = arith.constant 0.000000e+00 : f32
      %88 = vector.broadcast %cst_48 : f32 to vector<16x16xf32>
      %c0_49 = arith.constant 0 : index
      %c0_50 = arith.constant 0 : index
      %89 = vector.load %arg10[%c0_49, %c0_50] : memref<16x16xf32, #tpu.memory_space<vmem>>, vector<16x16xf32>
      tpu.vector_store %arg10[%c0_49, %c0_50], %88 {strides = array<i32>} : memref<16x16xf32, #tpu.memory_space<vmem>>, vector<16x16xf32>,
    } else {
    }
    %c0 = arith.constant 0 : index
    %c0_1 = arith.constant 0 : index
    %c0_2 = arith.constant 0 : index
    %c0_3 = arith.constant 0 : index
    %3 = vector.load %arg4[%c0, %c0_1, %c0_2, %c0_3] : memref<1x3x16x16xf32, #tpu.memory_space<vmem>>, vector<1x3x16x16xf32>
    %c0_4 = arith.constant 0 : index
    %c0_5 = arith.constant 0 : index
    %c0_6 = arith.constant 0 : index
    %c0_7 = arith.constant 0 : index
    %4 = vector.load %arg5[%c0_4, %c0_5, %c0_6, %c0_7] : memref<1x3x16x16xf32, #tpu.memory_space<vmem>>, vector<1x3x16x16xf32>
    %c0_8 = arith.constant 0 : index
    %c0_9 = arith.constant 0 : index
    %c0_10 = arith.constant 0 : index
    %5 = vector.load %arg6[%c0_8, %c0_9, %c0_10] : memref<1x16x16xf32, #tpu.memory_space<vmem>>, vector<1x16x16xf32>
    %6 = vector.extract_strided_slice %3 {offsets = [0, 0, 0, 0], sizes = [1, 1, 16, 16], strides = [1, 1, 1, 1]} : vector<1x3x16x16xf32> to vector<1x1x16x16xf32>
    %7 = vector.shape_cast %6 : vector<1x1x16x16xf32> to vector<1x16x16xf32>
    %8 = vector.extract_strided_slice %3 {offsets = [0, 1, 0, 0], sizes = [1, 1, 16, 16], strides = [1, 1, 1, 1]} : vector<1x3x16x16xf32> to vector<1x1x16x16xf32>
    %9 = vector.shape_cast %8 : vector<1x1x16x16xf32> to vector<1x16x16xf32>
    %10 = vector.extract_strided_slice %3 {offsets = [0, 2, 0, 0], sizes = [1, 1, 16, 16], strides = [1, 1, 1, 1]} : vector<1x3x16x16xf32> to vector<1x1x16x16xf32>
    %11 = vector.shape_cast %10 : vector<1x1x16x16xf32> to vector<1x16x16xf32>
    %12 = vector.extract_strided_slice %4 {offsets = [0, 0, 0, 0], sizes = [1, 1, 16, 16], strides = [1, 1, 1, 1]} : vector<1x3x16x16xf32> to vector<1x1x16x16xf32>
    %13 = vector.shape_cast %12 : vector<1x1x16x16xf32> to vector<1x16x16xf32>
    %14 = vector.extract_strided_slice %4 {offsets = [0, 1, 0, 0], sizes = [1, 1, 16, 16], strides = [1, 1, 1, 1]} : vector<1x3x16x16xf32> to vector<1x1x16x16xf32>
    %15 = vector.shape_cast %14 : vector<1x1x16x16xf32> to vector<1x16x16xf32>
    %16 = vector.extract_strided_slice %4 {offsets = [0, 2, 0, 0], sizes = [1, 1, 16, 16], strides = [1, 1, 1, 1]} : vector<1x3x16x16xf32> to vector<1x1x16x16xf32>
    %17 = vector.shape_cast %16 : vector<1x1x16x16xf32> to vector<1x16x16xf32>
    %18 = arith.subf %7, %13 : vector<1x16x16xf32>
    %19 = arith.subf %9, %15 : vector<1x16x16xf32>
    %20 = arith.subf %11, %17 : vector<1x16x16xf32>
    %21 = arith.mulf %18, %18 : vector<1x16x16xf32>
    %22 = arith.mulf %19, %19 : vector<1x16x16xf32>
    %23 = arith.addf %21, %22 : vector<1x16x16xf32>
    %24 = arith.mulf %20, %20 : vector<1x16x16xf32>
    %25 = arith.addf %23, %24 : vector<1x16x16xf32>
    %cst = arith.constant 1.000000e+02 : f32
    %26 = vector.broadcast %cst : f32 to vector<1x16x16xf32>
    %27 = arith.mulf %17, %26 : vector<1x16x16xf32>
    %cst_11 = arith.constant 1.000000e+00 : f32
    %28 = vector.broadcast %cst_11 : f32 to vector<1x16x16xf32>
    %29 = arith.cmpf ole, %27, %28 : vector<1x16x16xf32>
    %30 = arith.mulf %13, %13 : vector<1x16x16xf32>
    %31 = arith.mulf %15, %15 : vector<1x16x16xf32>
    %32 = arith.addf %30, %31 : vector<1x16x16xf32>
    %cst_12 = arith.constant 0.000000e+00 : f32
    %33 = vector.broadcast %cst_12 : f32 to vector<1x16x16xf32>
    %34 = arith.select %29, %32, %33 : vector<1x16x16xi1>, vector<1x16x16xf32>
    %35 = vector.shape_cast %5 : vector<1x16x16xf32> to vector<16x16xf32>
    %c15_i32 = arith.constant 15 : i32
    %36 = tpu.dynamic_rotate %35 by %c15_i32 dim 1 : vector<16x16xf32>, i32 -> vector<16x16xf32>
    %c1_i32 = arith.constant 1 : i32
    %37 = tpu.dynamic_rotate %35 by %c1_i32 dim 1 : vector<16x16xf32>, i32 -> vector<16x16xf32>
    %c15_i32_13 = arith.constant 15 : i32
    %38 = tpu.dynamic_rotate %35 by %c15_i32_13 dim 0 : vector<16x16xf32>, i32 -> vector<16x16xf32>
    %c1_i32_14 = arith.constant 1 : i32
    %39 = tpu.dynamic_rotate %35 by %c1_i32_14 dim 0 : vector<16x16xf32>, i32 -> vector<16x16xf32>
    %40 = arith.subf %36, %37 : vector<16x16xf32>
    %41 = arith.subf %38, %39 : vector<16x16xf32>
    %c1_i32_15 = arith.constant 1 : i32
    %42 = tpu.dynamic_rotate %40 by %c1_i32_15 dim 0 : vector<16x16xf32>, i32 -> vector<16x16xf32>
    %43 = arith.addf %42, %40 : vector<16x16xf32>
    %c15_i32_16 = arith.constant 15 : i32
    %44 = tpu.dynamic_rotate %40 by %c15_i32_16 dim 0 : vector<16x16xf32>, i32 -> vector<16x16xf32>
    %45 = arith.addf %43, %44 : vector<16x16xf32>
    %c1_i32_17 = arith.constant 1 : i32
    %46 = tpu.dynamic_rotate %41 by %c1_i32_17 dim 1 : vector<16x16xf32>, i32 -> vector<16x16xf32>
    %47 = arith.addf %46, %41 : vector<16x16xf32>
    %c15_i32_18 = arith.constant 15 : i32
    %48 = tpu.dynamic_rotate %41 by %c15_i32_18 dim 1 : vector<16x16xf32>, i32 -> vector<16x16xf32>
    %49 = arith.addf %47, %48 : vector<16x16xf32>
    %50 = vector.shape_cast %45 : vector<16x16xf32> to vector<1x16x16xf32>
    %51 = vector.shape_cast %49 : vector<16x16xf32> to vector<1x16x16xf32>
    %52 = arith.mulf %13, %50 : vector<1x16x16xf32>
    %53 = arith.mulf %15, %51 : vector<1x16x16xf32>
    %54 = arith.addf %52, %53 : vector<1x16x16xf32>
    %cst_19 = arith.constant 2.000000e+01 : f32
    %55 = vector.broadcast %cst_19 : f32 to vector<1x16x16xf32>
    %56 = arith.mulf %55, %54 : vector<1x16x16xf32>
    %c0_20 = arith.constant 0 : index
    %c0_21 = arith.constant 0 : index
    %57 = vector.load %arg3[%c0_20, %c0_21] : memref<16x16xf32, #tpu.memory_space<vmem>>, vector<16x16xf32>
    %58 = vector.shape_cast %57 : vector<16x16xf32> to vector<1x16x16xf32>
    %59 = arith.mulf %56, %58 : vector<1x16x16xf32>
    %cst_22 = arith.constant 1.000000e+02 : f32
    %60 = vector.broadcast %cst_22 : f32 to vector<1x16x16xf32>
    %61 = arith.mulf %60, %5 : vector<1x16x16xf32>
    %62 = arith.subf %27, %61 : vector<1x16x16xf32>
    %63 = arith.addf %62, %59 : vector<1x16x16xf32>
    %64 = math.absf %63 : vector<1x16x16xf32>
    %cst_23 = arith.constant 1.000000e+02 : f32
    %65 = vector.broadcast %cst_23 : f32 to vector<1x16x16xf32>
    %66 = arith.subf %64, %65 : vector<1x16x16xf32>
    %cst_24 = arith.constant 0.000000e+00 : f32
    %67 = vector.broadcast %cst_24 : f32 to vector<1x16x16xf32>
    %68 = arith.maximumf %66, %67 : vector<1x16x16xf32>
    %c0_25 = arith.constant 0 : index
    %c0_26 = arith.constant 0 : index
    %69 = vector.load %arg8[%c0_25, %c0_26] : memref<16x16xf32, #tpu.memory_space<vmem>>, vector<16x16xf32>
    %cst_27 = arith.constant dense<0.000000e+00> : vector<16x16xf32>
    %70 = vector.multi_reduction <add>, %25, %cst_27 [0] : vector<1x16x16xf32> to vector<16x16xf32>
    %71 = arith.addf %69, %70 : vector<16x16xf32>
    %c0_28 = arith.constant 0 : index
    %c0_29 = arith.constant 0 : index
    %72 = vector.load %arg8[%c0_28, %c0_29] : memref<16x16xf32, #tpu.memory_space<vmem>>, vector<16x16xf32>
    tpu.vector_store %arg8[%c0_28, %c0_29], %71 {strides = array<i32>} : memref<16x16xf32, #tpu.memory_space<vmem>>, vector<16x16xf32>,
    %c0_30 = arith.constant 0 : index
    %c0_31 = arith.constant 0 : index
    %73 = vector.load %arg9[%c0_30, %c0_31] : memref<16x16xf32, #tpu.memory_space<vmem>>, vector<16x16xf32>
    %cst_32 = arith.constant dense<0.000000e+00> : vector<16x16xf32>
    %74 = vector.multi_reduction <add>, %34, %cst_32 [0] : vector<1x16x16xf32> to vector<16x16xf32>
    %75 = arith.addf %73, %74 : vector<16x16xf32>
    %c0_33 = arith.constant 0 : index
    %c0_34 = arith.constant 0 : index
    %76 = vector.load %arg9[%c0_33, %c0_34] : memref<16x16xf32, #tpu.memory_space<vmem>>, vector<16x16xf32>
    tpu.vector_store %arg9[%c0_33, %c0_34], %75 {strides = array<i32>} : memref<16x16xf32, #tpu.memory_space<vmem>>, vector<16x16xf32>,
    %c0_35 = arith.constant 0 : index
    %c0_36 = arith.constant 0 : index
    %77 = vector.load %arg10[%c0_35, %c0_36] : memref<16x16xf32, #tpu.memory_space<vmem>>, vector<16x16xf32>
    %cst_37 = arith.constant dense<0.000000e+00> : vector<16x16xf32>
    %78 = vector.multi_reduction <add>, %68, %cst_37 [0] : vector<1x16x16xf32> to vector<16x16xf32>
    %79 = arith.addf %77, %78 : vector<16x16xf32>
    %c0_38 = arith.constant 0 : index
    %c0_39 = arith.constant 0 : index
    %80 = vector.load %arg10[%c0_38, %c0_39] : memref<16x16xf32, #tpu.memory_space<vmem>>, vector<16x16xf32>
    tpu.vector_store %arg10[%c0_38, %c0_39], %79 {strides = array<i32>} : memref<16x16xf32, #tpu.memory_space<vmem>>, vector<16x16xf32>,
    %c0_i32_40 = arith.constant 0 : i32
    %81 = arith.cmpi eq, %arg1, %c0_i32_40 : i32
    %82 = arith.extui %81 : i1 to i32
    %c0_i32_41 = arith.constant 0 : i32
    %83 = arith.cmpi ne, %82, %c0_i32_41 : i32
    scf.if %83 {
      %c0_42 = arith.constant 0 : index
      %c0_43 = arith.constant 0 : index
      %84 = vector.load %arg2[%c0_42, %c0_43] : memref<16x16xf32, #tpu.memory_space<vmem>>, vector<16x16xf32>
      %c0_44 = arith.constant 0 : index
      %c0_45 = arith.constant 0 : index
      %85 = vector.load %arg8[%c0_44, %c0_45] : memref<16x16xf32, #tpu.memory_space<vmem>>, vector<16x16xf32>
      %86 = arith.mulf %84, %85 : vector<16x16xf32>
      %87 = vector.shape_cast %86 : vector<16x16xf32> to vector<1x16x16xf32>
      %cst_46 = arith.constant dense<0.000000e+00> : vector<1xf32>
      %88 = vector.multi_reduction <add>, %87, %cst_46 [1, 2] : vector<1x16x16xf32> to vector<1xf32>
      %89 = vector.shape_cast %88 : vector<1xf32> to vector<1x1x1xf32>
      %90 = vector.extract %89[0, 0, 0] : f32 from vector<1x1x1xf32>
      %cst_47 = arith.constant 9.000000e+02 : f32
      %91 = arith.mulf %cst_47, %90 : f32
      %c0_48 = arith.constant 0 : index
      %c0_49 = arith.constant 0 : index
      %92 = vector.load %arg9[%c0_48, %c0_49] : memref<16x16xf32, #tpu.memory_space<vmem>>, vector<16x16xf32>
      %93 = arith.mulf %84, %92 : vector<16x16xf32>
      %94 = vector.shape_cast %93 : vector<16x16xf32> to vector<1x16x16xf32>
      %cst_50 = arith.constant dense<0.000000e+00> : vector<1xf32>
      %95 = vector.multi_reduction <add>, %94, %cst_50 [1, 2] : vector<1x16x16xf32> to vector<1xf32>
      %96 = vector.shape_cast %95 : vector<1xf32> to vector<1x1x1xf32>
      %97 = vector.extract %96[0, 0, 0] : f32 from vector<1x1x1xf32>
      %cst_51 = arith.constant 9.000000e+01 : f32
      %98 = arith.mulf %cst_51, %97 : f32
      %99 = arith.addf %91, %98 : f32
      %c0_52 = arith.constant 0 : index
      %c0_53 = arith.constant 0 : index
      %100 = vector.load %arg10[%c0_52, %c0_53] : memref<16x16xf32, #tpu.memory_space<vmem>>, vector<16x16xf32>
      %101 = arith.mulf %84, %100 : vector<16x16xf32>
      %102 = vector.shape_cast %101 : vector<16x16xf32> to vector<1x16x16xf32>
      %cst_54 = arith.constant dense<0.000000e+00> : vector<1xf32>
      %103 = vector.multi_reduction <add>, %102, %cst_54 [1, 2] : vector<1x16x16xf32> to vector<1xf32>
      %104 = vector.shape_cast %103 : vector<1xf32> to vector<1x1x1xf32>
      %105 = vector.extract %104[0, 0, 0] : f32 from vector<1x1x1xf32>
      %cst_55 = arith.constant 5.000000e-02 : f32
      %106 = arith.mulf %cst_55, %105 : f32
      %107 = arith.addf %99, %106 : f32
      %108 = vector.broadcast %107 : f32 to vector<1x8x128xf32>
      %c0_56 = arith.constant 0 : index
      %c0_57 = arith.constant 0 : index
      %c0_58 = arith.constant 0 : index
      %109 = vector.load %arg7[%c0_56, %c0_57, %c0_58] : memref<1x8x128xf32, #tpu.memory_space<vmem>>, vector<1x8x128xf32>
      tpu.vector_store %arg7[%c0_56, %c0_57, %c0_58], %108 {strides = array<i32>} : memref<1x8x128xf32, #tpu.memory_space<vmem>>, vector<1x8x128xf32>,
    } else {
    }
    return
  }
  func.func @transform_0(%arg0: i32, %arg1: i32) -> (i32, i32) {
    %c0_i32 = arith.constant 0 : i32
    %c0_i32_0 = arith.constant 0 : i32
    %c0_i32_1 = arith.constant 0 : i32
    return %c0_i32, %c0_i32_0 : i32, i32
  }
  func.func @transform_1(%arg0: i32, %arg1: i32) -> (i32, i32) {
    %c0_i32 = arith.constant 0 : i32
    %c0_i32_0 = arith.constant 0 : i32
    %c0_i32_1 = arith.constant 0 : i32
    return %c0_i32, %c0_i32_0 : i32, i32
  }
  func.func @transform_2(%arg0: i32, %arg1: i32) -> (i32, i32, i32, i32) {
    %c1_i32 = arith.constant 1 : i32
    %0 = arith.muli %arg0, %c1_i32 : i32
    %1 = arith.addi %0, %arg1 : i32
    %c0_i32 = arith.constant 0 : i32
    %c0_i32_0 = arith.constant 0 : i32
    %c0_i32_1 = arith.constant 0 : i32
    %c0_i32_2 = arith.constant 0 : i32
    return %1, %c0_i32, %c0_i32_0, %c0_i32_1 : i32, i32, i32, i32
  }
  func.func @transform_3(%arg0: i32, %arg1: i32) -> (i32, i32, i32, i32) {
    %c1_i32 = arith.constant 1 : i32
    %0 = arith.muli %arg0, %c1_i32 : i32
    %1 = arith.addi %0, %arg1 : i32
    %c0_i32 = arith.constant 0 : i32
    %c0_i32_0 = arith.constant 0 : i32
    %c0_i32_1 = arith.constant 0 : i32
    %c0_i32_2 = arith.constant 0 : i32
    return %1, %c0_i32, %c0_i32_0, %c0_i32_1 : i32, i32, i32, i32
  }
  func.func @transform_4(%arg0: i32, %arg1: i32) -> (i32, i32, i32) {
    %c1_i32 = arith.constant 1 : i32
    %0 = arith.muli %arg0, %c1_i32 : i32
    %1 = arith.addi %0, %arg1 : i32
    %c0_i32 = arith.constant 0 : i32
    %c0_i32_0 = arith.constant 0 : i32
    %c0_i32_1 = arith.constant 0 : i32
    return %1, %c0_i32, %c0_i32_0 : i32, i32, i32
  }
  func.func @transform_5(%arg0: i32, %arg1: i32) -> (i32, i32, i32) {
    %c0_i32 = arith.constant 0 : i32
    %c0_i32_0 = arith.constant 0 : i32
    %c0_i32_1 = arith.constant 0 : i32
    return %arg0, %c0_i32, %c0_i32_0 : i32, i32, i32
  }
}

</mosaic_0001>

<bundles_post_ra>
// kernel: physics_loss.1
= control target key start
LH: loop header
LB: loop body
LE: loop exit
PB: predicated region body
PF: predicated region fallthrough
CT: control target
= control target key end

     0   :  { %10 = vsyncpa [#allocation6], 0  ;;  %s1210_s0 = inlined_call_operand.vmem [shape: f32[16,16], index: 0, kind: input, shape index: {}]   ;;  %s1211_s1 = inlined_call_operand.vmem [shape: f32[16,16], index: 1, kind: input, shape index: {}]   ;;  %s1212_s2 = inlined_call_operand.hbm [shape: f32[2,3,16,16], index: 2, kind: input, shape index: {}]   ;;  %s1213_s3 = inlined_call_operand.hbm [shape: f32[2,3,16,16], index: 3, kind: input, shape index: {}]   ;;  %s1214_s4 = inlined_call_operand.vmem [shape: f32[2,16,16], index: 4, kind: input, shape index: {}]   ;;  %s1215_s5 = inlined_call_operand.vmem [shape: f32[2,8,128], index: 5, kind: output, shape index: {}]  }
   0x1   :  { %12 = vsyncpa [#allocation6 + $0x1], 0 }
   0x2   :  { %13 = vsyncpa [#allocation8], 0 }
   0x3   :  { %15 = vsyncpa [#allocation8 + $0x1], 0  ;;  %s947_s18 = smov 0   ;;  %s949_s19 = smov 0  }
   0x4   :  { %s951_s20 = smov 0   ;;  %s953_s21 = smov 0  }
   0x5   :  { %s955_s22 = smov 0   ;;  %s957_s23 = smov 0  }
   0x6 LB: > { %s699_s24 = sadd.s32 4294967295, %s904_s23   ;;  %s33_s25 = sadd.s32 1, %s900_s22  ;;  %s904_s23 = sphi %s957_s23, %s21_s23   ;;  %s900_s22 = sphi %s955_s22, %s1223_s22   ;;  %s896_s21 = sphi %s953_s21, %s1222_s21   ;;  %s892_s20 = sphi %s951_s20, %s1221_s20   ;;  %s888_s19 = sphi %s949_s19, %s1220_s19   ;;  %s884_s18 = sphi %s947_s18, %s1219_s18  }
   0x7   : > { %p35_p0 = scmp.ge.s32.totalorder %s33_s25, 2  ;;  %s84_s26 = sadd.s32 1, %s892_s20 }
   0x8   : > { %p91_p1 = scmp.ne.s32.totalorder %s892_s20, %s888_s19  ;;  %p92_p2 = scmp.eq.s32.totalorder %s904_s23, 0 }
   0x9   : > { %s1225_s25 = smov (%p35_p0, %s33_s25), 0  ;;  %p97_p4 = scmp.ne.s32.totalorder %s888_s19, %s884_s18 }
   0xa   : > { %p93_p3 = por %p92_p2, %p91_p1  ;;  %s81_s27 = ssub.s32 %s900_s22, %s1225_s25 }
   0xb   : > { %p98_p5 = scmp.eq.s32.totalorder %s699_s24, 0  ;;  %p82_p6 = scmp.eq.s32.totalorder %s81_s27, 0 }
   0xc   : > { %p736_p8 = scmp.lt.s32.totalorder %s904_s23, 2  ;;  %s995_s30 = sand.u32 1, %s892_s20  }
   0xd   : > { %p986_p7 = por %p98_p5, %p97_p4  ;;  %s715_s6 = smul.u32 768, %s900_s22 }
   0xe   : > { %s992_s29 = scalar_select %p82_p6, %s892_s20, %s84_s26  }
   0xf   : > { %s714_s7 = smul.u32 48, %s995_s30  ;;  %s220_s10 = scalar_lea.hbm %s1212_s2, %s715_s6 }
  0x10   : > { %p1004_p9 = pnand %p736_p8, %p93_p3  ;;  %s210_s14 = scalar_lea.sflag [#allocation6], %s995_s30 }
  0x11   : > { %s213_s12 = scalar_lea.vmem [#allocation5], %s714_s7  ;;  %s906_s16 = smov [#allocation5]  }
  0x12   : > { %s221_s13 = sshll.u32 %s213_s12, 4  ;;  %p796_p10 = pneg %p1004_p9  ;;  %s222_s13 = int_to_ptr.vmem [resolvable:$true] %s221_s13 }
  0x13   : > { %s807_s15 = scalar_lea.vmem %s222_s13, 768  ;;  %s812_s17 = sshll.u32 %s906_s16, 4  ;;  %s813_s17 = int_to_ptr.vmem [resolvable:$false] %s812_s17 }
  0x14   : > { %p808_p11 = scmp.ne.s32.totalorder %s222_s13, %s807_s15  ;;  %s814_s18 = scalar_lea.vmem %s813_s17, 1536 }
  0x15   : > { %p815_p0 = scmp.lt.s32.totalorder %s222_s13, %s813_s17  ;;  %p816_p1 = scmp.lt.s32.totalorder %s814_s18, %s807_s15 }
  0x16   : > { %p810_p12 = pnand %p808_p11, %p796_p10 }
  0x17   : > { %p817_p2 = por %p816_p1, %p815_p0 }
  0x18   : > { %p811_p13 = pneg %p810_p12 }
  0x1a   : > { %p818_p3 = pnand %p817_p2, %p811_p13 }
  0x1c   : > { %821 = shalt.err (!%p818_p3)
}
  0x1d   : > { %s907_s24 = smov 128   ;;  %s908_s26 = smov 8  }
  0x1e   : > { %732 = dma.hbm_to_vmem [thread:$0]  (!%p1004_p9), %s220_s10, 768, %s222_s13, %s210_s14, %s907_s24, %s907_s24, %s908_s26  }
  0x1f   : > { %p705_p4 = scmp.ge.s32.totalorder %s904_s23, 1  ;;  %p261_p5 = scmp.lt.s32.totalorder %s904_s23, 3 }
  0x20   : > { %s242_s12 = scalar_lea.hbm %s1213_s3, %s715_s6  ;;  %s235_s15 = scalar_lea.vmem [#allocation7], %s714_s7 }
  0x21   : > { %p1018_p6 = pnand %p705_p4, %p261_p5  ;;  %s243_s16 = sshll.u32 %s235_s15, 4  ;;  %s244_s16 = int_to_ptr.vmem [resolvable:$true] %s243_s16 }
  0x22   : > { %s232_s17 = scalar_lea.sflag [#allocation8], %s995_s30  ;;  %s835_s18 = scalar_lea.vmem %s244_s16, 768 }
  0x23   : > { %p836_p8 = scmp.ne.s32.totalorder %s244_s16, %s835_s18  ;;  %s909_s10 = smov [#allocation7]  }
  0x24   : > { %s840_s13 = sshll.u32 %s909_s10, 4  ;;  %s841_s13 = int_to_ptr.vmem [resolvable:$false] %s840_s13 }
  0x25   : > { %p838_p11 = pnand %p836_p8, %p796_p10  ;;  %s842_s14 = scalar_lea.vmem %s841_s13, 1536 }
  0x26   : > { %p843_p13 = scmp.lt.s32.totalorder %s244_s16, %s841_s13  ;;  %p844_p0 = scmp.lt.s32.totalorder %s842_s14, %s835_s18 }
  0x27   : > { %p839_p12 = pneg %p838_p11 }
  0x28   : > { %p845_p1 = por %p844_p0, %p843_p13 }
  0x2a   : > { %p846_p2 = pnand %p845_p1, %p839_p12 }
  0x2c   : > { %849 = shalt.err (!%p846_p2)
}
  0x2d   : > { %735 = dma.hbm_to_vmem [thread:$0]  (!%p1004_p9), %s242_s12, 768, %s244_s16, %s232_s17, %s907_s24, %s907_s24, %s908_s26  }
  0x2e   : > { %265 = sbr.rel (%p1018_p6) target bundleno = 773 (0x305), region = 40  ;;  %s267_s30 = sand.u32 (!%p1018_p6), 1, %s888_s19  }
  0x2f   : > { %s718_s6 = smul.u32 (!%p1018_p6), 48, %s267_s30  ;;  %s268_s7 = scalar_lea.sflag (!%p1018_p6), [#allocation6], %s267_s30 }
  0x31   : > { %s1036_s8 = scalar_lea.vmem (!%p1018_p6), [#allocation5], %s718_s6 }
  0x33   : > { %875 = dma.done.wait (%p986_p7), %s268_s7, 768  }
  0x34   : > { %877 = vsyncadd (%p986_p7), %s268_s7, 4294966528  ;;  %s277_s9 = scalar_lea.sflag [#allocation8], %s267_s30  ;;  %s1042_s15 = scalar_lea.vmem [#allocation7], %s718_s6 }
  0x35   : > { %879 = dma.done.wait (%p986_p7), %s277_s9, 768  }
  0x36   : > { %881 = vsyncadd (%p986_p7), %s277_s9, 4294966528  ;;  %p320_p9 = scmp.lt.s32.totalorder %s896_s21, 1  ;;  %v398_v0 = vlaneseq  ;;  %s910_s28 = smov 16   ;;  %vm383_vm2 = vcmask 1047680   ;;  %vm334_vm3 = vcmask 130048   ;;  %v341_v30 = vld [vmem:[%s1036_s8] sm:$0xff] }
  0x37   : > { %s911_s12 = smov 114   ;;  %s912_s16 = smov 15   ;;  %v343_v31 = vld [vmem:[%s1036_s8 + $0x10] sm:$0xff]  ;;  %v914_v34 = vmov 0.0   ;;  %v345_v35 = vld [vmem:[%s1036_s8 + $0x20] sm:$0xff]  ;;  %v342_v44 = vld [vmem:[%s1036_s8 + $0x8] sm:$0xff] }
  0x38   : > { %s1227_s21 = smov (!%p320_p9, %s896_s21), 1  ;;  %v1052_v1 = vshrl.u32 %v398_v0, 7  ;;  %s913_s17 = smov 14   ;;  %v1096_v32 = vld [vmem:[%s1042_s15 + $0x10] sm:$0xff]  ;;  %335 = vst.msk [vmem:[#allocation2] sm:$0xff] %vm334_vm3, %v914_v34  ;;  %337 = vst.msk [vmem:[#allocation3] sm:$0xff] %vm334_vm3, %v914_v34 }
  0x39   : > { %s713_s11 = sshll.u32 %s1227_s21, 4  ;;  %339 = vst.msk [vmem:[#allocation4] sm:$0xff] %vm334_vm3, %v914_v34  ;;  %v1103_v36 = vld [vmem:[%s1042_s15] sm:$0xff]  ;;  %v357_v38 = vsub.f32 %v343_v31, %v1096_v32  ;;  %v377_v39 = vmul.f32 %v1096_v32, %v1096_v32  ;;  %336 = vst.msk [vmem:[#allocation2 + $0x8] sm:$0xff] %vm334_vm3, %v914_v34  ;;  %v344_v45 = vld [vmem:[%s1036_s8 + $0x18] sm:$0xff]  ;;  %s915_s18 = smov 127  }
  0x3a   : > { %s324_s27 = scalar_lea.vmem %s1214_s4, %s713_s11  ;;  %vm400_vm0 = vcmp.lt.s32.totalorder %v1052_v1, 7  ;;  %vm405_vm1 = vcmp.lt.s32.totalorder %v1052_v1, 1  ;;  %v351_v37 = vld [vmem:[%s1042_s15 + $0x20] sm:$0xff]  ;;  %338 = vst.msk [vmem:[#allocation3 + $0x8] sm:$0xff] %vm334_vm3, %v914_v34  ;;  %340 = vst.msk [vmem:[#allocation4 + $0x8] sm:$0xff] %vm334_vm3, %v914_v34  ;;  %v355_v41 = vsub.f32 %v341_v30, %v1103_v36  ;;  %v346_v46 = vld [vmem:[%s1036_s8 + $0x28] sm:$0xff]  ;;  %v375_v48 = vmul.f32 %v1103_v36, %v1103_v36 }
  0x3b   : > { %v1058_v2 = vld [vmem:[%s324_s27] sm:$0xff]  ;;  %v1060_v3 = vld [vmem:[%s324_s27 + $0x8] sm:$0xff]  ;;  %v359_v42 = vsub.f32 %v345_v35, %v351_v37  ;;  %v1113_v43 = vmul.f32 100.0, %v351_v37  ;;  %v363_v47 = vmul.f32 %v357_v38, %v357_v38  ;;  %s916_s10 = smov 113  }
  0x3c   : > { %384 = vrot.lane.b32.xlu0 %v1058_v2, %s910_s28  ;;  %v396_v4 = vrot.slane %v1058_v2, 1  ;;  %v397_v5 = vrot.slane %v1060_v3, 1  ;;  %v403_v6 = vrot.slane %v1058_v2, 7  ;;  %v404_v7 = vrot.slane %v1060_v3, 7  ;;  %v1121_v49 = vld [vmem:[%s1042_s15 + $0x8] sm:$0xff]  ;;  %v1124_v50 = vld [vmem:[%s1042_s15 + $0x18] sm:$0xff] }
  0x3d   : > { %v352_v51 = vld [vmem:[%s1042_s15 + $0x28] sm:$0xff]  ;;  %v361_v52 = vmul.f32 %v355_v41, %v355_v41  ;;  %v367_v53 = vmul.f32 %v359_v42, %v359_v42  ;;  %vm373_vm4 = vcmp.le.f32.partialorder %v1113_v43, 1.0  ;;  %v356_v54 = vsub.f32 %v342_v44, %v1121_v49  ;;  %v488_v1 = vld [vmem:[%s1211_s1] sm:$0xff] }
  0x3e   : > { %v401_v8 = vsel %vm400_vm0, %v396_v4, %v397_v5  ;;  %v407_v9 = vsel %vm405_vm1, %v404_v7, %v403_v6  ;;  %v402_v10 = vsel %vm400_vm0, %v397_v5, %v396_v4  ;;  %v406_v11 = vsel %vm405_vm1, %v403_v6, %v404_v7 }
  0x3f   : > { %v418_v12 = vsub.f32 %v401_v8, %v407_v9  ;;  %v419_v13 = vsub.f32 %v402_v10, %v406_v11  ;;  %v379_v57 = vadd.f32 %v377_v39, %v375_v48  ;;  %v358_v58 = vsub.f32 %v344_v45, %v1124_v50  ;;  %v504_v8 = vld [vmem:[#allocation2] sm:$0xff]  ;;  %v513_v9 = vld [vmem:[#allocation3] sm:$0xff] }
  0x40   : > { %387 = vrot.lane.b32.xlu0 %v1060_v3, %s910_s28  ;;  %v360_v59 = vsub.f32 %v346_v46, %v352_v51  ;;  %v365_v61 = vadd.f32 %v363_v47, %v361_v52  ;;  %v362_v62 = vmul.f32 %v356_v54, %v356_v54  ;;  %v1130_v63 = vmul.f32 100.0, %v352_v51 }
  0x41   : > { %440 = vrot.lane.b32.xlu1 %v418_v12, %s910_s28  ;;  %v381_v0 = vsel %vm373_vm4, %v379_v57, 0.0  ;;  %v364_v4 = vmul.f32 %v358_v58, %v358_v58  ;;  %v376_v10 = vmul.f32 %v1121_v49, %v1121_v49 }
  0x42   : > { %v368_v5 = vmul.f32 %v360_v59, %v360_v59  ;;  %v369_v7 = vadd.f32 %v367_v53, %v365_v61  ;;  %vm374_vm5 = vcmp.le.f32.partialorder %v1130_v63, 1.0 }
  0x45   : > { %443 = vrot.lane.b32.xlu1 %v419_v13, %s910_s28 }
  0xae   : > { %v385_v14 = vpop.permute.xlu0 %384 }
  0xaf   : > { %v386_v15 = vsel %vm383_vm2, %v385_v14, %v1058_v2  ;;  %v366_v14 = vadd.f32 %v364_v4, %v362_v62  ;;  %v492_v4 = vmul.f32 100.0, %v1058_v2 }
  0xb0   : > { %390 = vrot.lane.b32.xlu0 %v386_v15, %s910_s28  ;;  %v378_v15 = vmul.f32 %v1124_v50, %v1124_v50 }
  0xb2   : > { %v388_v16 = vpop.permute.xlu0 %387 }
  0xb3   : > { %v389_v17 = vsel %vm383_vm2, %v388_v16, %v1060_v3  ;;  %v441_v18 = vpop.permute.xlu1 %440 }
  0xb4   : > { %392 = vrot.lane.b32.xlu1 %v389_v17, %s910_s28  ;;  %v442_v19 = vsel %vm383_vm2, %v441_v18, %v418_v12  ;;  %v508_v17 = vadd.f32 %v504_v8, %v369_v7  ;;  %v505_v18 = vld [vmem:[#allocation2 + $0x8] sm:$0xff] }
  0xb5   : > { %446 = vrot.lane.b32.xlu0 %v442_v19, %s910_s28  ;;  %v370_v19 = vadd.f32 %v368_v5, %v366_v14 }
  0xb6   : > { %511 = vst.msk [vmem:[#allocation2] sm:$0xff] %vm334_vm3, %v508_v17 }
  0xb7   : > { %v444_v20 = vpop.permute.xlu1 %443 }
  0xb8   : > { %v445_v21 = vsel %vm383_vm2, %v444_v20, %v419_v13  ;;  %v380_v20 = vadd.f32 %v378_v15, %v376_v10 }
  0xb9   : > { %448 = vrot.lane.b32.xlu1 %v445_v21, %s910_s28  ;;  %v514_v21 = vld [vmem:[#allocation3 + $0x8] sm:$0xff]  ;;  %s708_s28 = sshll.u32 %s1227_s21, 3 }
  0xba   : > { %s329_s13 = scalar_lea.vmem %s1215_s5, %s708_s28 }
  0xbd   : > { %v534_v30 = vld [vmem:[#allocation2] sm:$0xff] }
 0x122   : > { %v391_v22 = vpop.permute.xlu0 %390 }
 0x123   : > { %v394_v23 = vsel %vm383_vm2, %v391_v22, %v1058_v2  ;;  %v494_v2 = vsub.f32 %v1113_v43, %v492_v4 }
 0x124   : > { %410 = vrot.lane.b32.xlu0 %v394_v23, %s911_s12 }
 0x126   : > { %v393_v24 = vpop.permute.xlu1 %392 }
 0x127   : > { %v395_v25 = vsel %vm383_vm2, %v393_v24, %v1060_v3  ;;  %v447_v26 = vpop.permute.xlu0 %446  ;;  %v382_v24 = vsel %vm374_vm5, %v380_v20, 0.0 }
 0x128   : > { %454 = vrot.lane.b32.xlu0 %v418_v12, %s912_s16  ;;  %412 = vrot.lane.b32.xlu1 %v395_v25, %s911_s12  ;;  %v450_v27 = vsel %vm383_vm2, %v447_v26, %v418_v12 }
 0x12b   : > { %v449_v28 = vpop.permute.xlu1 %448 }
 0x12c   : > { %464 = vrot.lane.b32.xlu0 %v450_v27, %s913_s17  ;;  %456 = vrot.lane.b32.xlu1 %v419_v13, %s912_s16  ;;  %v1090_v29 = vsel %vm383_vm2, %v449_v28, %v419_v13  ;;  %v517_v13 = vadd.f32 %v513_v9, %v381_v0  ;;  %v1145_v28 = vld [vmem:[%s1210_s0] sm:$0xff]  ;;  %v493_v9 = vmul.f32 100.0, %v1060_v3 }
 0x12e   : > { %519 = vst.msk [vmem:[#allocation3] sm:$0xff] %vm334_vm3, %v517_v13 }
 0x130   : > { %466 = vrot.lane.b32.xlu1 %v1090_v29, %s913_s17 }
 0x135   : > { %v551_v38 = vld [vmem:[#allocation3] sm:$0xff] }
 0x136   : > { %v553_v41 = vmul.f32 %v551_v38, %v1145_v28 }
 0x138   : > { %v555_v44 = vsel %vm334_vm3, %v553_v41, 0.0 }
 0x196   : > { %v411_v33 = vpop.permute.xlu0 %410 }
 0x197   : > { %v416_v40 = vsub.f32 %v394_v23, %v411_v33  ;;  %v536_v33 = vmul.f32 %v534_v30, %v1145_v28 }
 0x199   : > { %422 = vrot.lane.b32.xlu0 %v416_v40, %s915_s18  ;;  %v538_v35 = vsel %vm334_vm3, %v536_v33, 0.0 }
 0x19a   : > { %v455_v55 = vpop.permute.xlu0 %454  ;;  %v413_v56 = vpop.permute.xlu1 %412 }
 0x19b   : > { %v417_v60 = vsub.f32 %v395_v25, %v413_v56  ;;  %v460_v6 = vadd.f32 %v455_v55, %v450_v27  ;;  %v509_v25 = vadd.f32 %v505_v18, %v370_v19  ;;  %v518_v27 = vadd.f32 %v514_v21, %v382_v24  ;;  %v521_v19 = vld [vmem:[#allocation4] sm:$0xff] }
 0x19d   : > { %424 = vrot.lane.b32.xlu1 %v417_v60, %s915_s18  ;;  %512 = vst.msk [vmem:[#allocation2 + $0x8] sm:$0xff] %vm334_vm3, %v509_v25  ;;  %520 = vst.msk [vmem:[#allocation3 + $0x8] sm:$0xff] %vm334_vm3, %v518_v27 }
 0x19e   : > { %v465_v11 = vpop.permute.xlu0 %464  ;;  %v457_v12 = vpop.permute.xlu1 %456 }
 0x19f   : > { %v470_v16 = vadd.f32 %v465_v11, %v460_v6  ;;  %v461_v22 = vadd.f32 %v457_v12, %v1090_v29  ;;  %v1150_v29 = vld [vmem:[%s1210_s0 + $0x8] sm:$0xff] }
 0x1a1   : > { %476 = vrot.lane.b32.xlu0 %v470_v16, %s916_s10 }
 0x1a2   : > { %v467_v23 = vpop.permute.xlu1 %466 }
 0x1a3   : > { %v471_v26 = vadd.f32 %v467_v23, %v461_v22  ;;  %v522_v22 = vld [vmem:[#allocation4 + $0x8] sm:$0xff] }
 0x1a4   : > { %v535_v31 = vld [vmem:[#allocation2 + $0x8] sm:$0xff]  ;;  %v552_v39 = vld [vmem:[#allocation3 + $0x8] sm:$0xff] }
 0x1a5   : > { %478 = vrot.lane.b32.xlu1 %v471_v26, %s916_s10  ;;  %v537_v34 = vmul.f32 %v535_v31, %v1150_v29  ;;  %v554_v42 = vmul.f32 %v552_v39, %v1150_v29 }
 0x1a7   : > { %v539_v37 = vsel %vm334_vm3, %v537_v34, 0.0  ;;  %v556_v45 = vsel %vm334_vm3, %v554_v42, 0.0 }
 0x1a8   : > { %v540_v40 = vadd.f32 %v539_v37, %v538_v35  ;;  %v557_v46 = vadd.f32 %v556_v45, %v555_v44 }
 0x1c0   : > { %541 = vadd.xlane.f32.xlu0 %v540_v40 }
 0x1c9   : > { %558 = vadd.xlane.f32.xlu1 %v557_v46 }
 0x20b   : > { %v423_v47 = vpop.permute.xlu0 %422 }
 0x20c   : > { %v428_v51 = vrot.slane %v423_v47, 7  ;;  %v434_v54 = vrot.slane %v423_v47, 1 }
 0x20f   : > { %v425_v48 = vpop.permute.xlu1 %424 }
 0x210   : > { %v429_v52 = vrot.slane %v425_v48, 7  ;;  %v435_v53 = vrot.slane %v425_v48, 1 }
 0x212   : > { %v430_v55 = vsel %vm405_vm1, %v428_v51, %v429_v52  ;;  %v431_v56 = vsel %vm405_vm1, %v429_v52, %v428_v51  ;;  %v437_v59 = vsel %vm400_vm0, %v435_v53, %v434_v54  ;;  %v436_v61 = vsel %vm400_vm0, %v434_v54, %v435_v53 }
 0x213   : > { %v433_v57 = vadd.f32 %v430_v55, %v425_v48  ;;  %v432_v58 = vadd.f32 %v431_v56, %v423_v47  ;;  %v477_v60 = vpop.permute.xlu0 %476 }
 0x214   : > { %v482_v6 = vmul.f32 %v477_v60, %v1096_v32  ;;  %v489_v32 = vld [vmem:[%s1211_s1 + $0x8] sm:$0xff] }
 0x215   : > { %v439_v62 = vadd.f32 %v437_v59, %v433_v57  ;;  %v438_v0 = vadd.f32 %v436_v61, %v432_v58 }
 0x217   : > { %v472_v5 = vmul.f32 %v438_v0, %v1103_v36  ;;  %v479_v7 = vpop.permute.xlu1 %478  ;;  %v473_v8 = vmul.f32 %v439_v62, %v1121_v49  ;;  %v495_v49 = vsub.f32 %v1130_v63, %v493_v9 }
 0x218   : > { %v483_v10 = vmul.f32 %v479_v7, %v1124_v50 }
 0x219   : > { %v484_v11 = vadd.f32 %v482_v6, %v472_v5 }
 0x21a   : > { %v485_v12 = vadd.f32 %v483_v10, %v473_v8 }
 0x21b   : > { %v486_v13 = vmul.f32 20.0, %v484_v11 }
 0x21c   : > { %v487_v36 = vmul.f32 20.0, %v485_v12 }
 0x21d   : > { %v490_v14 = vmul.f32 %v488_v1, %v486_v13 }
 0x21e   : > { %v491_v3 = vmul.f32 %v489_v32, %v487_v36 }
 0x21f   : > { %v496_v15 = vadd.f32 %v494_v2, %v490_v14 }
 0x220   : > { %v497_v50 = vadd.f32 %v495_v49, %v491_v3 }
 0x221   : > { %v498_v16 = vand.u32 2147483647, %v496_v15 }
 0x222   : > { %v499_v17 = vand.u32 2147483647, %v497_v50 }
 0x223   : > { %v709_v18 = vadd.f32 -100.0, %v498_v16 }
 0x224   : > { %v710_v20 = vadd.f32 -100.0, %v499_v17 }
 0x225   : > { %v502_v21 = vmax.f32 %v709_v18, 0.0 }
 0x226   : > { %v503_v23 = vmax.f32 %v710_v20, 0.0 }
 0x227   : > { %v525_v43 = vadd.f32 %v521_v19, %v502_v21 }
 0x228   : > { %v526_v24 = vadd.f32 %v522_v22, %v503_v23 }
 0x229   : > { %527 = vst.msk [vmem:[#allocation4] sm:$0xff] %vm334_vm3, %v525_v43 }
 0x22a   : > { %528 = vst.msk [vmem:[#allocation4 + $0x8] sm:$0xff] %vm334_vm3, %v526_v24 }
 0x230   : > { %v569_v25 = vld [vmem:[#allocation4] sm:$0xff] }
 0x231   : > { %v570_v63 = vld [vmem:[#allocation4 + $0x8] sm:$0xff]  ;;  %v571_v26 = vmul.f32 %v569_v25, %v1145_v28 }
 0x232   : > { %v572_v27 = vmul.f32 %v570_v63, %v1150_v29 }
 0x233   : > { %v573_v30 = vsel %vm334_vm3, %v571_v26, 0.0 }
 0x234   : > { %v574_v31 = vsel %vm334_vm3, %v572_v27, 0.0 }
 0x235   : > { %v575_v33 = vadd.f32 %v574_v31, %v573_v30 }
 0x237   : > { %576 = vadd.xlane.f32.xlu0 %v575_v33 }
 0x249   : > { %v542_v34 = vpop.xlane.xlu0 %541 }
 0x24a   : > { %v543_v35 = vrot.slane %v542_v34, 4 }
 0x24c   : > { %v544_v37 = vadd.f32 %v543_v35, %v542_v34 }
 0x24e   : > { %v545_v38 = vrot.slane %v544_v37, 2 }
 0x250   : > { %v546_v39 = vadd.f32 %v545_v38, %v544_v37 }
 0x252   : > { %v559_v40 = vpop.xlane.xlu1 %558  ;;  %v547_v41 = vrot.slane %v546_v39, 1 }
 0x253   : > { %v560_v42 = vrot.slane %v559_v40, 4 }
 0x254   : > { %v548_v44 = vadd.f32 %v547_v41, %v546_v39 }
 0x255   : > { %v561_v45 = vadd.f32 %v560_v42, %v559_v40 }
 0x256   : > { %719 = vpush %v548_v44 }
 0x257   : > { %v562_v28 = vrot.slane %v561_v45, 2 }
 0x259   : > { %v563_v46 = vadd.f32 %v562_v28, %v561_v45 }
 0x25b   : > { %v564_v29 = vrot.slane %v563_v46, 1 }
 0x25d   : > { %v565_v47 = vadd.f32 %v564_v29, %v563_v46 }
 0x25f   : > { %721 = vpush %v565_v47 }
 0x287   : > { %s720_s11 = spop %719 }
 0x288   : > { %s550_s26 = smul.f32 900.0, %s720_s11 }
 0x290   : > { %s722_s24 = spop %721 }
 0x291   : > { %s567_s27 = smul.f32 90.0, %s722_s24 }
 0x293   : > { %s568_s16 = sadd.f32 %s567_s27, %s550_s26 }
 0x2c0   : > { %v577_v48 = vpop.xlane.xlu0 %576 }
 0x2c1   : > { %v578_v51 = vrot.slane %v577_v48, 4 }
 0x2c3   : > { %v579_v52 = vadd.f32 %v578_v51, %v577_v48 }
 0x2c5   : > { %v580_v53 = vrot.slane %v579_v52, 2 }
 0x2c7   : > { %v581_v54 = vadd.f32 %v580_v53, %v579_v52 }
 0x2c9   : > { %v582_v55 = vrot.slane %v581_v54, 1 }
 0x2cb   : > { %v583_v56 = vadd.f32 %v582_v55, %v581_v54 }
 0x2cd   : > { %723 = vpush %v583_v56 }
 0x2fe   : > { %s724_s12 = spop %723 }
 0x2ff   : > { %s585_s17 = smul.f32 0.05, %s724_s12 }
 0x301   : > { %s586_s14 = sadd.f32 %s585_s17, %s568_s16 }
 0x303   : > { %v587_v57 = vstv %s586_s14 }
 0x304   : > { %588 = vst [vmem:[%s329_s13] sm:$0xff] %v587_v57 }
 0x305 PF: > { %s21_s23 = sadd.s32 1, %s904_s23   ;;  %s1219_s18 = smov %s888_s19 }
 0x306   : > { %p18_p7 = scmp.ge.s32.totalorder %s21_s23, 4   ;;  %s1220_s19 = smov %s892_s20 }
 0x307   : > { %s1221_s20 = smov %s992_s29  ;;  %s1222_s21 = smov %s900_s22 }
 0x308   : > { %s1223_s22 = smov %s1225_s25  ;;  %20 = sbr.rel (!%p18_p7) target bundleno = 6 (0x6), region = 104 }
 0x30d   :  { %608 = vsyncpa [#allocation6], 1 }
 0x30e   :  { %610 = vsyncpa [#allocation6 + $0x1], 1 }
 0x30f   :  { %611 = vsyncpa [#allocation8], 1 }
 0x310   :  { %613 = vsyncpa [#allocation8 + $0x1], 1 }

</bundles_post_ra>
